<compile_context>
chip_gen: v7x
topology: tpu7x:2x2x1
jax: 0.10.0
libtpu: 0.0.40
codegen_flags: <defaults>
</compile_context>

<pallas_src>
import math
from fractions import Fraction

import numpy as np
import jax
import jax.numpy as jnp
from jax.experimental import pallas as pl
from jax.experimental.pallas import tpu as pltpu


# ---------------------------------------------------------------------------
# Real Clebsch-Gordan coefficients (Wigner 3j in the real SH basis), host-side
# ---------------------------------------------------------------------------
def _su2_cg(j1, j2, j3, m1, m2, m3):
    """<j1 m1 ; j2 m2 | j3 m3> (Racah formula, complex SU(2) basis)."""
    if m3 != m1 + m2:
        return 0.0

    def F(n):
        return math.factorial(int(round(n)))

    vmin = int(max(-j1 + j2 + m3, -j1 + m1, 0))
    vmax = int(min(j2 + j3 + m1, j3 - j1 + j2, j3 + m3))
    C = math.sqrt(
        (2.0 * j3 + 1.0)
        * float(
            Fraction(
                F(j3 + j1 - j2) * F(j3 - j1 + j2) * F(j1 + j2 - j3)
                * F(j3 + m3) * F(j3 - m3),
                F(j1 + j2 + j3 + 1) * F(j1 - m1) * F(j1 + m1)
                * F(j2 - m2) * F(j2 + m2),
            )
        )
    )
    S = Fraction(0)
    for v in range(vmin, vmax + 1):
        S += (-1) ** int(v + j2 + m2) * Fraction(
            F(j2 + j3 + m1 - v) * F(j1 - m1 + v),
            F(v) * F(j3 - j1 + j2 - v) * F(j3 + m3 - v) * F(j1 - j2 - m3 + v),
        )
    return C * float(S)


def _q_real_to_complex(l):
    q = np.zeros((2 * l + 1, 2 * l + 1), dtype=np.complex128)
    for m in range(-l, 0):
        q[l + m, l + abs(m)] = 1.0 / math.sqrt(2.0)
        q[l + m, l - abs(m)] = -1j / math.sqrt(2.0)
    q[l, l] = 1.0
    for m in range(1, l + 1):
        q[l + m, l + abs(m)] = (-1) ** m / math.sqrt(2.0)
        q[l + m, l - abs(m)] = 1j * (-1) ** m / math.sqrt(2.0)
    return ((-1j) ** l) * q


def real_clebsch_gordan(l1, l2, l3):
    """Real CG tensor, shape (2*l3+1, 2*l1+1, 2*l2+1), unit Frobenius norm."""
    su2 = np.zeros((2 * l1 + 1, 2 * l2 + 1, 2 * l3 + 1), dtype=np.complex128)
    for i, m1 in enumerate(range(-l1, l1 + 1)):
        for j, m2 in enumerate(range(-l2, l2 + 1)):
            for k, m3 in enumerate(range(-l3, l3 + 1)):
                su2[i, j, k] = _su2_cg(l1, l2, l3, m1, m2, m3)
    Q1, Q2, Q3 = _q_real_to_complex(l1), _q_real_to_complex(l2), _q_real_to_complex(l3)
    C = np.einsum("ij,kl,mn,ikn->jlm", Q1, Q2, np.conj(Q3.T), su2)
    if np.abs(C.imag).max() > 1e-6:
        raise ValueError("real CG construction produced complex values")
    C = C.real
    C = C / np.linalg.norm(C)
    return np.transpose(C, (2, 0, 1))  # -> [M_out, m1, m2]


# ---------------------------------------------------------------------------
# Irreps helpers
# ---------------------------------------------------------------------------
class Irreps:
    def __init__(self, ls):
        self.ls = tuple(int(l) for l in ls)
        self.slices = []
        off = 0
        for l in self.ls:
            d = 2 * l + 1
            self.slices.append((off, d, l))
            off += d
        self.dim = off


def build_paths(irr_out, irr1, irr2):
    paths = []
    for io, (_, _, lo) in enumerate(irr_out.slices):
        for i1, (_, _, l1) in enumerate(irr1.slices):
            for i2, (_, _, l2) in enumerate(irr2.slices):
                if abs(l1 - l2) <= lo <= (l1 + l2):
                    paths.append((io, i1, i2))
    return paths


def _round_up(x, m):
    return ((x + m - 1) // m) * m


def _choose_tb(B, per_batch_bytes, target_bytes=2 << 20, max_tb=256,
               min_grid=2, sublane=1):
    """Batch tile: big enough to amortize the ~0.35us per-grid-step overhead,
    small enough to keep >= min_grid grid steps (v7x megacore sharding) and a
    bounded VMEM footprint.  sublane>1 forces tb to a multiple of 8 (used when
    tb is the sublane dim of a 2-D output block)."""
    tb = max(1, min(max_tb, target_bytes // max(per_batch_bytes, 1)))
    if B >= min_grid:
        tb = min(tb, -(-B // min_grid))
    tb = max(1, min(tb, max(B, 1)))
    if sublane > 1:
        tb = max(sublane, (tb // sublane) * sublane)
    return tb


# ---------------------------------------------------------------------------
# Pallas kernels
# ---------------------------------------------------------------------------
def tp_uuu_pallas(x1, x2, weight, cg_mat, dout, doutp, num_paths,
                  matmul_dtype=None):
    """Depthwise ('uuu') tensor product.

    x1:(B,D1,C)  x2:(B,D2,C)  weight:(P,C)
    cg_mat:(P*doutp, D1*D2p)  scaled real-CG table (doutp / D2p padded to 8)
    returns (B, dout, C)
    """
    B, D1, C = x1.shape
    D2 = x2.shape[1]
    P = num_paths
    D2p = _round_up(D2, 8)
    K = D1 * D2p
    PD = P * doutp
    Cp = _round_up(C, 128)                     # lane-dense channel axis

    per_batch = (D1 + D2p + doutp) * Cp * 4
    tb = _choose_tb(B, per_batch, target_bytes=2 << 20)
    bp = _round_up(B, tb)

    # Host side: zero padding only (no transposes, no weight replication).
    x1p, x2p, w = x1, x2, weight
    if Cp != C:
        x1p = jnp.pad(x1p, ((0, 0), (0, 0), (0, Cp - C)))
        x2p = jnp.pad(x2p, ((0, 0), (0, 0), (0, Cp - C)))
        w = jnp.pad(w, ((0, 0), (0, Cp - C)))
    if D2p != D2:
        x2p = jnp.pad(x2p, ((0, 0), (0, D2p - D2), (0, 0)))
    if bp != B:
        x1p = jnp.pad(x1p, ((0, bp - B), (0, 0), (0, 0)))
        x2p = jnp.pad(x2p, ((0, bp - B), (0, 0), (0, 0)))

    def kernel(cg_ref, w_ref, x1_ref, x2_ref, o_ref):
        x1b = x1_ref[...].astype(jnp.float32)               # (tb, D1, Cp)
        x2b = x2_ref[...].astype(jnp.float32)               # (tb, D2p, Cp)
        # (m1, m2) outer product; D2p % 8 == 0 keeps the merge tile-aligned.
        x12 = (x1b[:, :, None, :] * x2b[:, None, :, :]).reshape(tb, K, Cp)
        cg = cg_ref[...]
        if matmul_dtype is not None:                        # optional bf16 MXU path
            x12 = x12.astype(matmul_dtype)
            cg = cg.astype(matmul_dtype)
        cgb = jnp.broadcast_to(cg, (tb, PD, K))
        # One batched MXU matmul over all (m1, m2) pairs and all paths at once.
        t = jnp.einsum("bok,bkc->boc", cgb, x12,
                       preferred_element_type=jnp.float32)  # (tb, PD, Cp)
        # Per-path per-channel weighting + path reduction (P is tiny).
        wv = w_ref[...].astype(jnp.float32)                 # (P, Cp)
        acc = jnp.zeros((tb, doutp, Cp), jnp.float32)
        for p in range(P):
            acc = acc + t[:, p * doutp:(p + 1) * doutp, :] * wv[p:p + 1, :]
        o_ref[...] = acc.astype(o_ref.dtype)

    out = pl.pallas_call(
        kernel,
        out_shape=jax.ShapeDtypeStruct((bp, doutp, Cp), x1.dtype),
        grid=(bp // tb,),
        in_specs=[
            pl.BlockSpec((PD, K), lambda b: (0, 0)),          # resident CG
            pl.BlockSpec((P, Cp), lambda b: (0, 0)),          # resident weight
            pl.BlockSpec((tb, D1, Cp), lambda b: (b, 0, 0)),
            pl.BlockSpec((tb, D2p, Cp), lambda b: (b, 0, 0)),
        ],
        out_specs=pl.BlockSpec((tb, doutp, Cp), lambda b: (b, 0, 0)),
        compiler_params=pltpu.CompilerParams(
            dimension_semantics=("parallel",),
            vmem_limit_bytes=64 * 1024 * 1024),
    )(cg_mat, w, x1p, x2p)

    return out[:B, :dout, :C]


def tp_uvw_pallas(x1, x2, weight, cg_dense, dout, doutp, matmul_dtype=None):
    """Fully connected ('uvw') tensor product.

    x1:(B,D1,C1)  x2:(B,D2,C2)  weight:(P,C1,C2,Cout)
    cg_dense:(P, dout, D1, D2) scaled real CG over the full irreps dims
    returns (B, dout, Cout)
    """
    B, D1, C1 = x1.shape
    D2, C2 = x2.shape[1], x2.shape[2]
    Cout = weight.shape[-1]
    coutp = _round_up(Cout, 128)               # lane-dense output channels
    MW = doutp * coutp
    NN = D1 * C1 * MW

    # CG folded into the weight (tiny host-side einsum) so the kernel has no
    # per-path loop and no per-path temporaries:
    #   fold[m2, v, (m1, u, M, w)] = sum_p CG[p, M, m1, m2] * W[p, u, v, w]
    fold = jnp.einsum("pMij,puvw->jviuMw", cg_dense,
                      weight.astype(jnp.float32))
    fold = jnp.pad(fold, ((0, 0), (0, 0), (0, 0), (0, 0),
                          (0, doutp - dout), (0, coutp - Cout)))
    fold = fold.reshape(D2, C2, NN)
    if matmul_dtype is not None:
        fold = fold.astype(matmul_dtype)

    per_batch = (D1 * C1 + D2 * C2 + MW + NN) * 4      # incl. the h temporary
    tb = _choose_tb(B, per_batch, target_bytes=4 << 20, sublane=8)
    bp = _round_up(B, tb)

    x1p = x1 if bp == B else jnp.pad(x1, ((0, bp - B), (0, 0), (0, 0)))
    x2p = x2 if bp == B else jnp.pad(x2, ((0, bp - B), (0, 0), (0, 0)))

    def kernel(fold_ref, x1_ref, x2_ref, o_ref):
        x1b = x1_ref[...].astype(jnp.float32)            # (tb, D1, C1)
        x2b = x2_ref[...].astype(jnp.float32)            # (tb, D2, C2)
        # ---- stage 1 (MXU): contract (m2, v) against the folded weight ----
        #   h[b, (m1, u, M, w)] = sum_{m2, v} x2[b, m2, v] * fold[m2, v, ...]
        h = None
        for m2 in range(D2):                             # irreps dim: small, unrolled
            lhs = x2b[:, m2, :]                          # (tb, C2)
            if matmul_dtype is not None:
                lhs = lhs.astype(matmul_dtype)
            part = jnp.dot(lhs, fold_ref[m2],
                           preferred_element_type=jnp.float32)  # (tb, NN)
            h = part if h is None else h + part
        # ---- stage 2 (VPU): contract (m1, u) via lane-aligned slabs --------
        #   out[b, (M, w)] = sum_{m1, u} x1[b, m1, u] * h[b, (m1, u, M, w)]
        # TODO(synk): switch to lax.fori_loop with pl.ds lane slices if C1 is large.
        acc = jnp.zeros((tb, MW), jnp.float32)
        for m1 in range(D1):
            for u in range(C1):
                k = m1 * C1 + u
                acc = acc + x1b[:, m1, u:u + 1] * h[:, k * MW:(k + 1) * MW]
        o_ref[...] = acc.astype(o_ref.dtype)

    out = pl.pallas_call(
        kernel,
        out_shape=jax.ShapeDtypeStruct((bp, MW), x1.dtype),
        grid=(bp // tb,),
        in_specs=[
            pl.BlockSpec((D2, C2, NN), lambda b: (0, 0, 0)),  # resident folded W
            pl.BlockSpec((tb, D1, C1), lambda b: (b, 0, 0)),
            pl.BlockSpec((tb, D2, C2), lambda b: (b, 0, 0)),
        ],
        out_specs=pl.BlockSpec((tb, MW), lambda b: (b, 0)),
        compiler_params=pltpu.CompilerParams(
            dimension_semantics=("parallel",),
            vmem_limit_bytes=64 * 1024 * 1024),
    )(fold, x1p, x2p)

    out = out.reshape(bp, doutp, coutp)
    return out[:B, :dout, :Cout]


# ---------------------------------------------------------------------------
# Module-like wrapper (parameter setup / constant tables = glue in plain JAX)
# ---------------------------------------------------------------------------
class TensorProduct:
    def __init__(self, irreps_in1, irreps_in2, irreps_out,
                 channels_in1=None, channels_in2=None, channels_out=None,
                 feature_mode="uuu", path_norm=True, channel_norm=False,
                 matmul_dtype=None, key=None):
        assert feature_mode in ("uuu", "uvw")
        self.irreps_in1 = Irreps(irreps_in1)
        self.irreps_in2 = Irreps(irreps_in2)
        self.irreps_out = Irreps(irreps_out)
        self.channels_in1 = channels_in1
        self.channels_in2 = channels_in2
        self.channels_out = channels_out
        self.feature_mode = feature_mode
        self.matmul_dtype = matmul_dtype

        if feature_mode == "uuu":
            assert channels_in1 == channels_in2 == channels_out, (
                "'uuu' mode requires channels_in1 == channels_in2 == channels_out")

        self.paths = build_paths(self.irreps_out, self.irreps_in1, self.irreps_in2)
        self.num_paths = len(self.paths)
        P = self.num_paths
        D1, D2, Do = self.irreps_in1.dim, self.irreps_in2.dim, self.irreps_out.dim
        D2p = _round_up(D2, 8)
        self.dout_pad = _round_up(Do, 8)

        fan_in = channels_in1 * channels_in2 if feature_mode == "uvw" else 1
        channel_scale = fan_in ** (-0.5)
        counts = {}
        for (io, _, _) in self.paths:
            counts[io] = counts.get(io, 0) + 1

        cg_dense = np.zeros((P, Do, D1, D2), np.float64)
        self.cg_blocks = []  # (pidx, so, do, s1, d1, s2, d2, scaled_block)
        for pidx, (io, i1, i2) in enumerate(self.paths):
            so, do, lo = self.irreps_out.slices[io]
            s1, d1, l1 = self.irreps_in1.slices[i1]
            s2, d2, l2 = self.irreps_in2.slices[i2]
            blk = real_clebsch_gordan(l1, l2, lo)
            scale = channel_scale
            if path_norm:
                scale = scale / math.sqrt(counts[io])
            blk = blk * scale
            self.cg_blocks.append((pidx, so, do, s1, d1, s2, d2, blk))
            cg_dense[pidx, so:so + do, s1:s1 + d1, s2:s2 + d2] = blk

        # CG tables in the layouts the kernels use.
        cg_uuu = np.zeros((P, self.dout_pad, D1, D2p), np.float64)
        cg_uuu[:, :Do, :, :D2] = cg_dense
        self.cg_uuu = jnp.asarray(
            cg_uuu.reshape(P * self.dout_pad, D1 * D2p), jnp.float32)
        self.cg_dense = jnp.asarray(cg_dense, jnp.float32)     # (P, Do, D1, D2)

        if feature_mode == "uuu":
            self.weight_shape = (P, channels_out)
        else:
            self.weight_shape = (P, channels_in1, channels_in2, channels_out)
        self.weight_numel = int(np.prod(self.weight_shape))
        # deterministic synthetic init (stand-in for initialize_tensor_product)
        self.weight = jax.random.normal(key, self.weight_shape, jnp.float32)

    def __call__(self, input1, input2):
        assert input1.shape[-2] == self.irreps_in1.dim
        assert input2.shape[-2] == self.irreps_in2.dim
        if self.feature_mode == "uuu":
            assert input1.shape[-1] == input2.shape[-1] == self.channels_in1
            return tp_uuu_pallas(input1, input2, self.weight, self.cg_uuu,
                                 self.irreps_out.dim, self.dout_pad,
                                 self.num_paths, self.matmul_dtype)
        else:
            assert input1.shape[-1] == self.channels_in1
            assert input2.shape[-1] == self.channels_in2
            return tp_uvw_pallas(input1, input2, self.weight, self.cg_dense,
                                 self.irreps_out.dim, self.dout_pad,
                                 self.matmul_dtype)


# ---------------------------------------------------------------------------
# Pure-JAX references (for correctness checks)
# ---------------------------------------------------------------------------
def reference_uuu(tp, x1, x2):
    B, _, C = x1.shape
    out = jnp.zeros((B, tp.irreps_out.dim, C), jnp.float32)
    for (pidx, so, do, s1, d1, s2, d2, blk) in tp.cg_blocks:
        cg = jnp.asarray(blk, jnp.float32)
        seg = jnp.einsum("Mij,nic,njc->nMc", cg,
                         x1[:, s1:s1 + d1, :], x2[:, s2:s2 + d2, :])
        seg = seg * tp.weight[pidx][None, None, :]
        out = out.at[:, so:so + do, :].add(seg)
    return out


def reference_uvw(tp, x1, x2):
    B = x1.shape[0]
    Cout = tp.weight.shape[-1]
    out = jnp.zeros((B, tp.irreps_out.dim, Cout), jnp.float32)
    for (pidx, so, do, s1, d1, s2, d2, blk) in tp.cg_blocks:
        cg = jnp.asarray(blk, jnp.float32)
        seg = jnp.einsum("Mij,niu,njv,uvw->nMw", cg,
                         x1[:, s1:s1 + d1, :], x2[:, s2:s2 + d2, :], tp.weight[pidx])
        out = out.at[:, so:so + do, :].add(seg)
    return out


# ---------------------------------------------------------------------------
# Demo
# ---------------------------------------------------------------------------
if __name__ == "__main__":
    key = jax.random.PRNGKey(0)
    k1, k2, k3, k4, kw1, kw2 = jax.random.split(key, 6)

    irreps = [0, 1]          # scalar + vector -> irreps dim = 1 + 3 = 4
    B = 16

    # ---- 'uuu' depthwise mode (module default) ----
    C = 128
    tp_uuu = TensorProduct(irreps, irreps, irreps, C, C, C,
                           feature_mode="uuu", key=kw1)
    x1 = jax.random.normal(k1, (B, tp_uuu.irreps_in1.dim, C), jnp.float32)
    x2 = jax.random.normal(k2, (B, tp_uuu.irreps_in2.dim, C), jnp.float32)
    out_uuu = tp_uuu(x1, x2)
    jax.block_until_ready(out_uuu)
    ref_uuu = reference_uuu(tp_uuu, x1, x2)
    assert out_uuu.shape == (B, tp_uuu.irreps_out.dim, C)
    np.testing.assert_allclose(np.asarray(out_uuu), np.asarray(ref_uuu),
                               rtol=1e-4, atol=2e-4)

    # ---- 'uvw' fully connected mode ----
    C1, C2, Cout = 8, 8, 128
    tp_uvw = TensorProduct(irreps, irreps, irreps, C1, C2, Cout,
                           feature_mode="uvw", key=kw2)
    y1 = jax.random.normal(k3, (B, tp_uvw.irreps_in1.dim, C1), jnp.float32)
    y2 = jax.random.normal(k4, (B, tp_uvw.irreps_in2.dim, C2), jnp.float32)
    out_uvw = tp_uvw(y1, y2)
    jax.block_until_ready(out_uvw)
    ref_uvw = reference_uvw(tp_uvw, y1, y2)
    assert out_uvw.shape == (B, tp_uvw.irreps_out.dim, Cout)
    np.testing.assert_allclose(np.asarray(out_uvw), np.asarray(ref_uvw),
                               rtol=1e-4, atol=2e-4)

    print("KERNEL_OK")
</pallas_src>

<mosaic_0001>
module attributes {stable_mosaic.version = 11 : i64} {
  func.func @kernel(%arg0: i32, %arg1: memref<40x32xf32, #tpu.memory_space<vmem>>, %arg2: memref<5x128xf32, #tpu.memory_space<vmem>>, %arg3: memref<8x4x128xf32, #tpu.memory_space<vmem>>, %arg4: memref<8x8x128xf32, #tpu.memory_space<vmem>>, %arg5: memref<8x8x128xf32, #tpu.memory_space<vmem>>) attributes {dimension_semantics = [#tpu.dimension_semantics<parallel>], iteration_bounds = array<i64: 2>, scalar_prefetch = 0 : i64, scratch_operands = 0 : i64, tpu.core_type = #tpu.core_type<tc>, window_params = [{pipeline_mode = #tpu.pipeline_mode<synchronous>, transform_indices = @transform_0, window_bounds = array<i64: 40, 32>}, {pipeline_mode = #tpu.pipeline_mode<synchronous>, transform_indices = @transform_1, window_bounds = array<i64: 5, 128>}, {transform_indices = @transform_2, window_bounds = array<i64: 8, 4, 128>}, {transform_indices = @transform_3, window_bounds = array<i64: 8, 8, 128>}, {transform_indices = @transform_4, window_bounds = array<i64: 8, 8, 128>}]} {
    %c0 = arith.constant 0 : index
    %c0_0 = arith.constant 0 : index
    %c0_1 = arith.constant 0 : index
    %0 = vector.load %arg3[%c0, %c0_0, %c0_1] : memref<8x4x128xf32, #tpu.memory_space<vmem>>, vector<8x4x128xf32>
    %c0_2 = arith.constant 0 : index
    %c0_3 = arith.constant 0 : index
    %c0_4 = arith.constant 0 : index
    %1 = vector.load %arg4[%c0_2, %c0_3, %c0_4] : memref<8x8x128xf32, #tpu.memory_space<vmem>>, vector<8x8x128xf32>
    %2 = vector.shape_cast %0 : vector<8x4x128xf32> to vector<8x4x1x128xf32>
    %3 = vector.shape_cast %1 : vector<8x8x128xf32> to vector<8x1x8x128xf32>
    %4 = vector.broadcast %2 : vector<8x4x1x128xf32> to vector<8x4x8x128xf32>
    %5 = vector.broadcast %3 : vector<8x1x8x128xf32> to vector<8x4x8x128xf32>
    %6 = arith.mulf %4, %5 : vector<8x4x8x128xf32>
    %7 = vector.shape_cast %6 : vector<8x4x8x128xf32> to vector<8x32x128xf32>
    %c0_5 = arith.constant 0 : index
    %c0_6 = arith.constant 0 : index
    %8 = vector.load %arg1[%c0_5, %c0_6] : memref<40x32xf32, #tpu.memory_space<vmem>>, vector<40x32xf32>
    %9 = vector.shape_cast %8 : vector<40x32xf32> to vector<1x40x32xf32>
    %10 = vector.broadcast %9 : vector<1x40x32xf32> to vector<8x40x32xf32>
    "tpu.trace_start"() <{level = 10 : i32, message = "bok,bkc->boc"}> : () -> ()
    %cst = arith.constant dense<0.000000e+00> : vector<8x40x128xf32>
    %11 = tpu.matmul %10, %7, %cst {dimension_numbers = #tpu.dot_dimension_numbers<[2], [1], [1], [2], [0, 0, 0, 1, 1, 2], [0], [0]>} : vector<8x40x32xf32>, vector<8x32x128xf32>, vector<8x40x128xf32> -> vector<8x40x128xf32>
    "tpu.trace_stop"() : () -> ()
    %c0_7 = arith.constant 0 : index
    %c0_8 = arith.constant 0 : index
    %12 = vector.load %arg2[%c0_7, %c0_8] : memref<5x128xf32, #tpu.memory_space<vmem>>, vector<5x128xf32>
    %cst_9 = arith.constant 0.000000e+00 : f32
    %13 = vector.broadcast %cst_9 : f32 to vector<8x8x128xf32>
    %14 = vector.extract_strided_slice %11 {offsets = [0, 0, 0], sizes = [8, 8, 128], strides = [1, 1, 1]} : vector<8x40x128xf32> to vector<8x8x128xf32>
    %15 = vector.extract_strided_slice %12 {offsets = [0, 0], sizes = [1, 128], strides = [1, 1]} : vector<5x128xf32> to vector<1x128xf32>
    %16 = vector.shape_cast %15 : vector<1x128xf32> to vector<1x1x128xf32>
    %17 = vector.broadcast %16 : vector<1x1x128xf32> to vector<8x8x128xf32>
    %18 = arith.mulf %14, %17 : vector<8x8x128xf32>
    %19 = arith.addf %13, %18 : vector<8x8x128xf32>
    %20 = vector.extract_strided_slice %11 {offsets = [0, 8, 0], sizes = [8, 8, 128], strides = [1, 1, 1]} : vector<8x40x128xf32> to vector<8x8x128xf32>
    %21 = vector.extract_strided_slice %12 {offsets = [1, 0], sizes = [1, 128], strides = [1, 1]} : vector<5x128xf32> to vector<1x128xf32>
    %22 = vector.shape_cast %21 : vector<1x128xf32> to vector<1x1x128xf32>
    %23 = vector.broadcast %22 : vector<1x1x128xf32> to vector<8x8x128xf32>
    %24 = arith.mulf %20, %23 : vector<8x8x128xf32>
    %25 = arith.addf %19, %24 : vector<8x8x128xf32>
    %26 = vector.extract_strided_slice %11 {offsets = [0, 16, 0], sizes = [8, 8, 128], strides = [1, 1, 1]} : vector<8x40x128xf32> to vector<8x8x128xf32>
    %27 = vector.extract_strided_slice %12 {offsets = [2, 0], sizes = [1, 128], strides = [1, 1]} : vector<5x128xf32> to vector<1x128xf32>
    %28 = vector.shape_cast %27 : vector<1x128xf32> to vector<1x1x128xf32>
    %29 = vector.broadcast %28 : vector<1x1x128xf32> to vector<8x8x128xf32>
    %30 = arith.mulf %26, %29 : vector<8x8x128xf32>
    %31 = arith.addf %25, %30 : vector<8x8x128xf32>
    %32 = vector.extract_strided_slice %11 {offsets = [0, 24, 0], sizes = [8, 8, 128], strides = [1, 1, 1]} : vector<8x40x128xf32> to vector<8x8x128xf32>
    %33 = vector.extract_strided_slice %12 {offsets = [3, 0], sizes = [1, 128], strides = [1, 1]} : vector<5x128xf32> to vector<1x128xf32>
    %34 = vector.shape_cast %33 : vector<1x128xf32> to vector<1x1x128xf32>
    %35 = vector.broadcast %34 : vector<1x1x128xf32> to vector<8x8x128xf32>
    %36 = arith.mulf %32, %35 : vector<8x8x128xf32>
    %37 = arith.addf %31, %36 : vector<8x8x128xf32>
    %38 = vector.extract_strided_slice %11 {offsets = [0, 32, 0], sizes = [8, 8, 128], strides = [1, 1, 1]} : vector<8x40x128xf32> to vector<8x8x128xf32>
    %39 = vector.extract_strided_slice %12 {offsets = [4, 0], sizes = [1, 128], strides = [1, 1]} : vector<5x128xf32> to vector<1x128xf32>
    %40 = vector.shape_cast %39 : vector<1x128xf32> to vector<1x1x128xf32>
    %41 = vector.broadcast %40 : vector<1x1x128xf32> to vector<8x8x128xf32>
    %42 = arith.mulf %38, %41 : vector<8x8x128xf32>
    %43 = arith.addf %37, %42 : vector<8x8x128xf32>
    %c0_10 = arith.constant 0 : index
    %c0_11 = arith.constant 0 : index
    %c0_12 = arith.constant 0 : index
    %44 = vector.load %arg5[%c0_10, %c0_11, %c0_12] : memref<8x8x128xf32, #tpu.memory_space<vmem>>, vector<8x8x128xf32>
    tpu.vector_store %arg5[%c0_10, %c0_11, %c0_12], %43 {strides = array<i32>} : memref<8x8x128xf32, #tpu.memory_space<vmem>>, vector<8x8x128xf32>,
    return
  }
  func.func @transform_0(%arg0: i32) -> (i32, i32) {
    %c0_i32 = arith.constant 0 : i32
    %c0_i32_0 = arith.constant 0 : i32
    %c0_i32_1 = arith.constant 0 : i32
    return %c0_i32, %c0_i32_0 : i32, i32
  }
  func.func @transform_1(%arg0: i32) -> (i32, i32) {
    %c0_i32 = arith.constant 0 : i32
    %c0_i32_0 = arith.constant 0 : i32
    %c0_i32_1 = arith.constant 0 : i32
    return %c0_i32, %c0_i32_0 : i32, i32
  }
  func.func @transform_2(%arg0: i32) -> (i32, i32, i32) {
    %c0_i32 = arith.constant 0 : i32
    %c0_i32_0 = arith.constant 0 : i32
    %c0_i32_1 = arith.constant 0 : i32
    return %arg0, %c0_i32, %c0_i32_0 : i32, i32, i32
  }
  func.func @transform_3(%arg0: i32) -> (i32, i32, i32) {
    %c0_i32 = arith.constant 0 : i32
    %c0_i32_0 = arith.constant 0 : i32
    %c0_i32_1 = arith.constant 0 : i32
    return %arg0, %c0_i32, %c0_i32_0 : i32, i32, i32
  }
  func.func @transform_4(%arg0: i32) -> (i32, i32, i32) {
    %c0_i32 = arith.constant 0 : i32
    %c0_i32_0 = arith.constant 0 : i32
    %c0_i32_1 = arith.constant 0 : i32
    return %arg0, %c0_i32, %c0_i32_0 : i32, i32, i32
  }
}

</mosaic_0001>

<bundles_post_ra>
// kernel: tpu_custom_call.1
= control target key start
LH: loop header
LB: loop body
LE: loop exit
PB: predicated region body
PF: predicated region fallthrough
CT: control target
= control target key end

     0   :  { %s2962_s0 = inlined_call_operand.hbm [shape: f32[40,32], index: 0, kind: input, shape index: {}]   ;;  %s2963_s1 = inlined_call_operand.hbm [shape: f32[5,128], index: 1, kind: input, shape index: {}]   ;;  %s2964_s2 = inlined_call_operand.hbm [shape: f32[16,4,128], index: 2, kind: input, shape index: {}]   ;;  %s2965_s3 = inlined_call_operand.hbm [shape: f32[16,8,128], index: 3, kind: input, shape index: {}]   ;;  %s2966_s4 = inlined_call_operand.hbm [shape: f32[16,8,128], index: 4, kind: output, shape index: {}]  }
   0x1   :  { %2977 = sst [smem:[#allocation15_spill]] %s2962_s0 }
   0x2   :  { %2978 = sst [smem:[#allocation16_spill]] %s2964_s2 }
   0x3   :  { %9 = vsyncpa [#allocation3], 0 }
   0x4   :  { %10 = vsyncpa [#allocation6], 0 }
   0x5   :  { %11 = vsyncpa [#allocation4], 0 }
   0x6   :  { %13 = vsyncpa [#allocation4 + $0x1], 0  ;;  %s2356_s15 = smov 0   ;;  %s2358_s16 = smov 0  }
   0x7   :  { %s2360_s17 = smov 0   ;;  %s2362_s18 = smov 0  }
   0x8 LB: > { %s2377_s19 = sadd.s32 4294967295, %s2314_s18   ;;  %s1665_s20 = sadd.s32 4294967294, %s2314_s18   ;;  %s2314_s18 = sphi %s2362_s18, %s3011_s18   ;;  %s2310_s17 = sphi %s2360_s17, %s3010_s17   ;;  %s2306_s16 = sphi %s2358_s16, %s3009_s16   ;;  %s2302_s15 = sphi %s2356_s15, %s3008_s15  }
   0x9   : > { %s2381_s21 = sadd.s32 1, %s2314_s18   ;;  %s68_s22 = sadd.s32 1, %s2310_s17 }
   0xa   : > { %s65_s23 = ssub.s32 %s2314_s18, %s2381_s21  ;;  %p75_p0 = scmp.ne.s32.totalorder %s2310_s17, %s2306_s16 }
   0xb   : > { %p66_p1 = scmp.eq.s32.totalorder %s65_s23, 0  ;;  %p76_p2 = scmp.eq.s32.totalorder %s2314_s18, 0 }
   0xc   : > { %p81_p3 = scmp.ne.s32.totalorder %s2306_s16, %s2302_s15  ;;  %p2967_p4 = scmp.eq.s32.totalorder %s2377_s19, 0 }
   0xd   : > { %s2393_s24 = scalar_select %p66_p1, %s2310_s17, %s68_s22  }
   0xe   : > { %p2395_p5 = por %p76_p2, %p75_p0  ;;  %p2401_p6 = por %p2967_p4, %p81_p3 }
   0xf   : > { %2979 = sst [smem:[#allocation14_spill]] %s2393_s24  ;;  %p131_p7 = scmp.eq.s32.totalorder %s2377_s19, 1 }
  0x10   : > { %s2980_s25 = scalar_select %p2395_p5, 1, 0 }
  0x11   : > { %s2981_s26 = scalar_select %p2401_p6, 1, 0 }
  0x12   : > { %p137_p8 = scmp.eq.s32.totalorder %s1665_s20, 1  ;;  %p1666_p9 = scmp.ge.s32.totalorder %s2314_s18, 1 }
  0x13   : > { %p144_p10 = scmp.lt.s32.totalorder %s2314_s18, 3  ;;  %p2408_p11 = por %p131_p7, %p75_p0 }
  0x14   : > { %p2412_p12 = por %p137_p8, %p81_p3  ;;  %s2316_s30 = smov [#allocation2]  }
  0x15   : > { %s2982_s27 = scalar_select %p2408_p11, 1, 0 }
  0x16   : > { %s2983_s28 = scalar_select %p2412_p12, 1, 0 }
  0x17   : > { %p2416_p13 = pnand %p1666_p9, %p144_p10  ;;  %s156_s5 = sshll.u32 %s2316_s30, 4  ;;  %s157_s5 = int_to_ptr.vmem [resolvable:$true] %s156_s5 }
  0x18   : > { %s181_s7 = sand.u32 1, %s2314_s18   ;;  %s2986_s0 = sld [smem:[#allocation15_spill]] }
  0x19   : > { %s2984_s29 = scalar_select %p2416_p13, 1, 0 }
  0x1a   : > { %p2056_p1 = pneg %p2416_p13 }
  0x1c   : > { %p2424_p2 = pnand %p2056_p1, %p2967_p4 }
  0x1e   : > { %s2124_s10 = scalar_lea.hbm %s2986_s0, 640  ;;  %p2973_p8 = pneg %p2424_p2 }
  0x1f   : > { %p2125_p7 = scmp.ne.s32.totalorder %s2986_s0, %s2124_s10  ;;  %p2131_p1 = scmp.lt.u32.totalorder %s2124_s10, %s2986_s0 }
  0x21   : > { %p2127_p9 = pnand %p2973_p8, %p2125_p7 }
  0x23   : > { %p2128_p10 = pneg %p2127_p9 }
  0x25   : > { %p2133_p0 = pnand %p2131_p1, %p2128_p10 }
  0x27   : > { %2136 = shalt.err (!%p2133_p0)
}
  0x28   : > { %s2137_s20 = scalar_lea.vmem %s157_s5, 640  ;;  %p2145_p11 = scmp.lt.s32.totalorder %s157_s5, %s157_s5 }
  0x29   : > { %p2138_p4 = scmp.ne.s32.totalorder %s157_s5, %s2137_s20  ;;  %p2146_p6 = scmp.lt.s32.totalorder %s2137_s20, %s2137_s20 }
  0x2b   : > { %p2140_p3 = pnand %p2138_p4, %p2973_p8  ;;  %p2147_p13 = por %p2146_p6, %p2145_p11 }
  0x2d   : > { %p2141_p12 = pneg %p2140_p3 }
  0x2f   : > { %p2148_p5 = pnand %p2147_p13, %p2141_p12 }
  0x31   : > { %2151 = shalt.err (!%p2148_p5)
}
  0x32   : > { %s2971_s22 = smov 128   ;;  %s2972_s23 = smov 8  }
  0x33   : > { %2059 = dma.hbm_to_vmem [thread:$0]  (!%p2424_p2), %s2986_s0, 640, %s157_s5, [#allocation3], %s2971_s22, %s2971_s22, %s2972_s23  }
  0x34   : > { %p2987_p4 = scmp.ne.s32.totalorder %s2980_s25, 0  ;;  %p2988_p6 = scmp.lt.s32.totalorder %s2314_s18, 2 }
  0x35   : > { %s183_s10 = sand.u32 1, %s2310_s17   ;;  %s1735_s12 = sshll.u32 %s2314_s18, 9 }
  0x36   : > { %p2460_p11 = pnand %p2988_p6, %p2987_p4  ;;  %s1670_s11 = sshll.u32 %s183_s10, 5 }
  0x37   : > { %s2990_s2 = sld [smem:[#allocation16_spill]]  ;;  %s185_s25 = scalar_lea.vmem [#allocation7], %s1670_s11 }
  0x38   : > { %s2989_s9 = scalar_select %p2460_p11, 1, 0 }
  0x39   : > { %s192_s5 = sshll.u32 %s185_s25, 4  ;;  %s2475_s30 = scalar_lea.sflag [#allocation3], %s181_s7  ;;  %s2473_s5 = int_to_ptr.vmem [resolvable:$true] %s192_s5 }
  0x3a   : > { %p2974_p12 = pneg %p2460_p11 }
  0x3d   : > { %s2471_s20 = scalar_lea.hbm %s2990_s2, %s1735_s12  ;;  %s2157_s14 = scalar_lea.hbm %s2990_s2, 1024 }
  0x3e   : > { %s2152_s8 = scalar_lea.hbm %s2471_s20, 512  ;;  %p2158_p3 = scmp.lt.u32.totalorder %s2471_s20, %s2990_s2 }
  0x3f   : > { %p2153_p5 = scmp.ne.s32.totalorder %s2471_s20, %s2152_s8  ;;  %p2159_p7 = scmp.lt.u32.totalorder %s2157_s14, %s2152_s8 }
  0x40   : > { %p2161_p10 = scmp.lt.u32.totalorder %s2152_s8, %s2471_s20 }
  0x41   : > { %p2155_p13 = pnand %p2974_p12, %p2153_p5  ;;  %p2160_p9 = por %p2159_p7, %p2158_p3 }
  0x43   : > { %p2156_p0 = pneg %p2155_p13  ;;  %p2162_p1 = por %p2161_p10, %p2160_p9 }
  0x45   : > { %p2163_p4 = pnand %p2162_p1, %p2156_p0 }
  0x47   : > { %2166 = shalt.err (!%p2163_p4)
}
  0x48   : > { %s2167_s7 = scalar_lea.vmem %s2473_s5, 512  ;;  %s2319_s11 = smov [#allocation7]  }
  0x49   : > { %p2168_p6 = scmp.ne.s32.totalorder %s2473_s5, %s2167_s7  ;;  %s2172_s25 = sshll.u32 %s2319_s11, 4  ;;  %s2173_s25 = int_to_ptr.vmem [resolvable:$false] %s2172_s25 }
  0x4a   : > { %s2174_s22 = scalar_lea.vmem %s2173_s25, 1024  ;;  %p2175_p8 = scmp.lt.s32.totalorder %s2473_s5, %s2173_s25 }
  0x4b   : > { %p2170_p5 = pnand %p2168_p6, %p2974_p12  ;;  %p2176_p3 = scmp.lt.s32.totalorder %s2174_s22, %s2167_s7 }
  0x4d   : > { %p2171_p13 = pneg %p2170_p5  ;;  %p2177_p7 = por %p2176_p3, %p2175_p8 }
  0x4f   : > { %p2178_p9 = pnand %p2177_p7, %p2171_p13 }
  0x51   : > { %2181 = shalt.err (!%p2178_p9)
}
  0x52   : > { %s2320_s23 = smov 64   ;;  %s2321_s8 = smov 4  }
  0x53   : > { %2066 = dma.hbm_to_vmem [thread:$0]  (!%p2460_p11), %s2471_s20, 512, %s2473_s5, %s2475_s30, %s2320_s23, %s2320_s23, %s2321_s8  }
  0x54   : > { %s2322_s12 = smov [#allocation5]   ;;  %s1673_s14 = sshll.u32 %s183_s10, 6 }
  0x55   : > { %s170_s13 = sshll.u32 %s2322_s12, 4  ;;  %s2182_s25 = scalar_lea.hbm %s2963_s1, 128  ;;  %s171_s13 = int_to_ptr.vmem [resolvable:$true] %s170_s13 }
  0x56   : > { %p2183_p8 = scmp.ne.s32.totalorder %s2963_s1, %s2182_s25  ;;  %p2991_p0 = pneg %p2424_p2 }
  0x57   : > { %p2189_p4 = scmp.lt.u32.totalorder %s2182_s25, %s2963_s1 }
  0x58   : > { %p2185_p10 = pnand %p2183_p8, %p2991_p0 }
  0x5a   : > { %p2186_p1 = pneg %p2185_p10 }
  0x5c   : > { %p2191_p6 = pnand %p2189_p4, %p2186_p1 }
  0x5e   : > { %2194 = shalt.err (!%p2191_p6)
}
  0x5f   : > { %s2195_s10 = scalar_lea.vmem %s171_s13, 128  ;;  %p2992_p13 = pmov %p2991_p0 }
  0x60   : > { %p2196_p5 = scmp.ne.s32.totalorder %s171_s13, %s2195_s10  ;;  %p2203_p9 = scmp.lt.s32.totalorder %s171_s13, %s171_s13 }
  0x61   : > { %p2204_p12 = scmp.lt.s32.totalorder %s2195_s10, %s2195_s10 }
  0x62   : > { %p2198_p3 = pnand %p2196_p5, %p2992_p13 }
  0x63   : > { %p2205_p11 = por %p2204_p12, %p2203_p9 }
  0x64   : > { %p2199_p7 = pneg %p2198_p3 }
  0x66   : > { %p2206_p0 = pnand %p2205_p11, %p2199_p7 }
  0x68   : > { %2209 = shalt.err (!%p2206_p0)
}
  0x69   : > { %2062 = dma.hbm_to_vmem [thread:$0]  (!%p2424_p2), %s2963_s1, 128, %s171_s13, [#allocation6]  }
  0x6a   : > { %s1736_s2 = sshll.u32 %s2314_s18, 10  ;;  %s206_s24 = scalar_lea.vmem [#allocation8], %s1673_s14 }
  0x6b   : > { %s213_s5 = sshll.u32 %s206_s24, 4  ;;  %s2529_s12 = scalar_lea.hbm %s2965_s3, %s1736_s2  ;;  %s2531_s5 = int_to_ptr.vmem [resolvable:$true] %s213_s5 }
  0x6c   : > { %s2210_s6 = scalar_lea.hbm %s2529_s12, 1024  ;;  %p2993_p12 = scmp.ne.s32.totalorder %s2989_s9, 0 }
  0x6d   : > { %p2211_p11 = scmp.ne.s32.totalorder %s2529_s12, %s2210_s6  ;;  %s2215_s11 = scalar_lea.hbm %s2965_s3, 2048 }
  0x6e   : > { %p2994_p8 = pneg %p2993_p12  ;;  %p2216_p1 = scmp.lt.u32.totalorder %s2529_s12, %s2965_s3 }
  0x6f   : > { %p2217_p4 = scmp.lt.u32.totalorder %s2215_s11, %s2210_s6  ;;  %p2219_p5 = scmp.lt.u32.totalorder %s2210_s6, %s2529_s12 }
  0x70   : > { %p2213_p10 = pnand %p2211_p11, %p2994_p8 }
  0x71   : > { %p2218_p6 = por %p2217_p4, %p2216_p1 }
  0x72   : > { %p2214_p2 = pneg %p2213_p10 }
  0x73   : > { %p2220_p13 = por %p2219_p5, %p2218_p6 }
  0x75   : > { %p2221_p3 = pnand %p2220_p13, %p2214_p2 }
  0x77   : > { %2224 = shalt.err (!%p2221_p3)
}
  0x78   : > { %s2225_s22 = scalar_lea.vmem %s2531_s5, 1024  ;;  %p2995_p9 = pmov %p2994_p8 }
  0x79   : > { %p2226_p7 = scmp.ne.s32.totalorder %s2531_s5, %s2225_s22  ;;  %s2323_s10 = smov [#allocation8]  }
  0x7a   : > { %s2230_s0 = sshll.u32 %s2323_s10, 4  ;;  %s2231_s0 = int_to_ptr.vmem [resolvable:$false] %s2230_s0 }
  0x7b   : > { %p2228_p0 = pnand %p2226_p7, %p2995_p9  ;;  %s2232_s20 = scalar_lea.vmem %s2231_s0, 2048 }
  0x7c   : > { %p2233_p8 = scmp.lt.s32.totalorder %s2531_s5, %s2231_s0  ;;  %p2234_p10 = scmp.lt.s32.totalorder %s2232_s20, %s2225_s22 }
  0x7d   : > { %p2229_p11 = pneg %p2228_p0 }
  0x7e   : > { %p2235_p1 = por %p2234_p10, %p2233_p8 }
  0x80   : > { %p2236_p4 = pnand %p2235_p1, %p2229_p11 }
  0x82   : > { %2239 = shalt.err (!%p2236_p4)
}
  0x83   : > { %s2996_s2 = smov 8   ;;  %s2997_s24 = smov 128  }
  0x84   : > { %2069 = dma.hbm_to_vmem [thread:$0]  (!%p2993_p12), %s2529_s12, 1024, %s2531_s5, %s2475_s30, %s2997_s24, %s2997_s24, %s2996_s2  }
  0x85   : > { %p2998_p2 = scmp.ne.s32.totalorder %s2984_s29, 0 }
  0x86   : > { %p2999_p6 = scmp.eq.s32.totalorder (!%p2998_p2), %s2377_s19, 0 }
  0x87   : > { %225 = sbr.rel (%p2998_p2) target bundleno = 482 (0x1e2), region = 36 }
  0x8e   : > { %2285 = dma.done.wait (%p2999_p6), [#allocation3], 640   ;;  %p3000_p5 = pmov %p2999_p6 }
  0x90   : > { %2287 = vsyncadd (%p3000_p5), [#allocation3], 4294966656  ;;  %p3001_p13 = pmov %p3000_p5 }
  0x91   : > { %p3002_p3 = pmov %p3000_p5 }
  0x92   : > { %2289 = dma.done.wait (%p3001_p13), [#allocation6], 128  }
  0x93   : > { %2291 = vsyncadd (%p3002_p3), [#allocation6], 4294967168  ;;  %s235_s9 = sand.u32 1, %s2377_s19   ;;  %s2572_s30 = sand.u32 1, %s2306_s16  }
  0x94   : > { %s1679_s29 = sshll.u32 %s2572_s30, 5  ;;  %s236_s5 = scalar_lea.sflag [#allocation3], %s235_s9 }
  0x95   : > { %s2575_s23 = scalar_lea.vmem [#allocation7], %s1679_s29  ;;  %p3003_p12 = scmp.ne.s32.totalorder %s2981_s26, 0 }
  0x97   : > { %2293 = dma.done.wait (%p3003_p12), %s236_s5, 1536  }
  0x98   : > { %2295 = vsyncadd (%p3003_p12), %s236_s5, 4294965760  ;;  %v316_v0 = vlaneseq  ;;  %v2324_v1 = vmov 0.0|0.0   ;;  %v2325_v2 = vmov 1966171168   ;;  %vm2326_vm0 = vmmov 0   ;;  %s1680_s26 = sshll.u32 %s2572_s30, 6 }
  0x99   : > { %1994 = vmatprep.subr.bf16.mxu0 %v2324_v1  ;;  %2000 = vmatprep.subr.bf16.mxu1 %v2324_v1  ;;  %v314_v3 = vunpack.c.l.s4 %v2325_v2  ;;  %v2327_v5 = vmov 0.0   ;;  %v1682_v9 = vld.sshfl [vmem:[%s2575_s23] sm:$0x33 pattern:$0x75316420]  ;;  %s2601_s8 = scalar_lea.vmem [#allocation8], %s1680_s26 }
  0x9a   : > { %v2583_v4 = vshrl.u32 %v316_v0, 7  ;;  %1818 = vmatprep.mubr.msk.f32.mxu0 %vm2326_vm0, %v2327_v5  ;;  %1841 = vmatprep.mubr.msk.f32.mxu1 %vm2326_vm0, %v2327_v5  ;;  %v312_v10 = vcombine.high %v1682_v9, %v1682_v9  ;;  %v1683_v12 = vld.sshfl [vmem:[%s2575_s23 + $0x4] sm:$0x33 pattern:$0x75316420]  ;;  %v290_v20 = vld [vmem:[%s2601_s8 + $0x8] sm:$0xff] }
  0x9b   : > { %v315_v6 = vunpack.c.0.s8 %v314_v3  ;;  %v289_v13 = vld [vmem:[%s2601_s8] sm:$0xff]  ;;  %v336_v14 = vcombine.high %v1683_v12, %v1683_v12  ;;  %v1684_v16 = vld.sshfl [vmem:[%s2575_s23 + $0x8] sm:$0x33 pattern:$0x75316420]  ;;  %v291_v38 = vld [vmem:[%s2601_s8 + $0x10] sm:$0xff] }
  0x9c   : > { %v2594_v8 = vsub.s32 0, %v2583_v4  ;;  %v360_v21 = vcombine.high %v1684_v16, %v1684_v16  ;;  %v1685_v34 = vld.sshfl [vmem:[%s2575_s23 + $0xc] sm:$0x33 pattern:$0x75316420]  ;;  %v292_v54 = vld [vmem:[%s2601_s8 + $0x18] sm:$0xff] }
  0x9d   : > { %v2591_v7 = vsub.s32 %v315_v6, %v2583_v4  ;;  %v384_v47 = vcombine.high %v1685_v34, %v1685_v34  ;;  %v2632_v3 = vld [vmem:[#allocation2] sm:$0xff]  ;;  %vm694_vm1 = vcmask 261120   ;;  %s2871_s12 = scalar_lea.vmem [#allocation9], %s1680_s26  ;;  %s1737_s13 = sshll.u32 %s2377_s19, 10 }
  0x9e   : > { %s1553_s6 = sshll.u32 %s2871_s12, 4  ;;  %s2916_s7 = scalar_lea.hbm %s2966_s4, %s1737_s13  ;;  %s2910_s6 = int_to_ptr.vmem [resolvable:$true] %s1553_s6 }
  0x9f   : > { %v319_v11 = vrot.slane %v1682_v9, %v2591_v7  ;;  %v343_v15 = vrot.slane %v1683_v12, %v2591_v7  ;;  %v326_v17 = vrot.slane %v312_v10, %v2591_v7  ;;  %v350_v22 = vrot.slane %v336_v14, %v2591_v7  ;;  %v1686_v14 = vld.sshfl [vmem:[%s2575_s23 + $0x10] sm:$0x33 pattern:$0x75316420]  ;;  %s1540_s19 = scalar_lea.sflag [#allocation4], %s2572_s30  ;;  %s2240_s25 = scalar_lea.vmem %s2910_s6, 1024 }
  0xa0   : > { %v367_v25 = vrot.slane %v1684_v16, %v2591_v7  ;;  %v374_v39 = vrot.slane %v360_v21, %v2591_v7  ;;  %v391_v51 = vrot.slane %v1685_v34, %v2591_v7  ;;  %v398_v55 = vrot.slane %v384_v47, %v2591_v7  ;;  %p2241_p7 = scmp.ne.s32.totalorder %s2910_s6, %s2240_s25  ;;  %p3004_p9 = scmp.ne.s32.totalorder %s2982_s27, 0 }
  0xa1   : > { %v327_v18 = vcombine.high %v319_v11, %v319_v11  ;;  %v500_v19 = vrot.slane %v319_v11, %v2594_v8  ;;  %v351_v23 = vcombine.high %v343_v15, %v343_v15  ;;  %v516_v24 = vrot.slane %v343_v15, %v2594_v8  ;;  %s2328_s22 = smov [#allocation9]  }
  0xa2   : > { %v328_v26 = vcombine.high %v326_v17, %v326_v17  ;;  %v504_v27 = vrot.slane %v326_v17, %v2594_v8  ;;  %v352_v30 = vcombine.high %v350_v22, %v350_v22  ;;  %v520_v31 = vrot.slane %v350_v22, %v2594_v8  ;;  %v1687_v17 = vld.sshfl [vmem:[%s2575_s23 + $0x14] sm:$0x33 pattern:$0x75316420]  ;;  %p2242_p0 = pnand %p2241_p7, %p3004_p9  ;;  %s2244_s10 = sshll.u32 %s2328_s22, 4  ;;  %s2245_s10 = int_to_ptr.vmem [resolvable:$false] %s2244_s10 }
  0xa3   : > { %v657_v28 = vmul.f32 %v500_v19, %v289_v13  ;;  %v508_v29 = vrot.slane %v327_v18, %v2594_v8  ;;  %v661_v32 = vmul.f32 %v516_v24, %v290_v20  ;;  %v524_v33 = vrot.slane %v351_v23, %v2594_v8  ;;  %v2644_v19 = vld [vmem:[#allocation2 + $0x8] sm:$0xff]  ;;  %v2658_v24 = vld [vmem:[#allocation2 + $0x10] sm:$0xff]  ;;  %s2246_s0 = scalar_lea.vmem %s2245_s10, 2048  ;;  %p2247_p8 = scmp.lt.s32.totalorder %s2910_s6, %s2245_s10 }
  0xa4   : > { %v658_v35 = vmul.f32 %v504_v27, %v289_v13  ;;  %v512_v36 = vrot.slane %v328_v26, %v2594_v8  ;;  %v662_v40 = vmul.f32 %v520_v31, %v290_v20  ;;  %v528_v41 = vrot.slane %v352_v30, %v2594_v8  ;;  %p2243_p11 = pneg %p2242_p0  ;;  %p2248_p10 = scmp.lt.s32.totalorder %s2246_s0, %s2240_s25 }
  0xa5   : > { %v659_v37 = vmul.f32 %v508_v29, %v289_v13  ;;  %v663_v42 = vmul.f32 %v524_v33, %v290_v20  ;;  %v532_v43 = vrot.slane %v367_v25, %v2594_v8  ;;  %v536_v46 = vrot.slane %v374_v39, %v2594_v8  ;;  %v2674_v29 = vld [vmem:[#allocation2 + $0x18] sm:$0xff] }
  0xa6   : > { %v1995_v44 = vpack.c.bf16 %v658_v35, %v657_v28  ;;  %v660_v45 = vmul.f32 %v512_v36, %v289_v13  ;;  %v2001_v48 = vpack.c.bf16 %v662_v40, %v661_v32  ;;  %v664_v49 = vmul.f32 %v528_v41, %v290_v20  ;;  %v293_v32 = vld [vmem:[%s2601_s8 + $0x20] sm:$0xff]  ;;  %v2690_v40 = vld [vmem:[#allocation2 + $0x20] sm:$0xff]  ;;  %p2249_p1 = por %p2248_p10, %p2247_p8 }
  0xa7   : > { %v665_v50 = vmul.f32 %v532_v43, %v291_v38  ;;  %v666_v53 = vmul.f32 %v536_v46, %v291_v38  ;;  %v375_v56 = vcombine.high %v367_v25, %v367_v25  ;;  %v548_v58 = vrot.slane %v391_v51, %v2594_v8 }
  0xa8   : > { %1996 = vmatpush3.bf16.msra.mxu0 %v1995_v44  ;;  %v1998_v52 = vpack.c.bf16 %v660_v45, %v659_v37  ;;  %2002 = vmatpush3.bf16.msra.mxu1 %v2001_v48  ;;  %v2004_v57 = vpack.c.bf16 %v664_v49, %v663_v42  ;;  %v376_v59 = vcombine.high %v374_v39, %v374_v39  ;;  %v294_v37 = vld [vmem:[%s2601_s8 + $0x28] sm:$0xff]  ;;  %p2250_p4 = pnand %p2249_p1, %p2243_p11 }
  0xa9   : > { %1997 = vmatprep.subr.bf16.mxu0 %v2324_v1  ;;  %2003 = vmatprep.subr.bf16.mxu1 %v2324_v1  ;;  %v552_v60 = vrot.slane %v398_v55, %v2594_v8  ;;  %v540_v61 = vrot.slane %v375_v56, %v2594_v8  ;;  %v399_v62 = vcombine.high %v391_v51, %v391_v51  ;;  %v1689_v56 = vld.sshfl [vmem:[%s2575_s23 + $0x1c] sm:$0x33 pattern:$0x75316420] }
  0xaa   : > { %v669_v63 = vmul.f32 %v548_v58, %v292_v54  ;;  %v544_v0 = vrot.slane %v376_v59, %v2594_v8  ;;  %v400_v2 = vcombine.high %v398_v55, %v398_v55  ;;  %v2007_v6 = vpack.c.bf16 %v666_v53, %v665_v50  ;;  %v1688_v53 = vld.sshfl [vmem:[%s2575_s23 + $0x18] sm:$0x33 pattern:$0x75316420] }
  0xab   : > { %v670_v9 = vmul.f32 %v552_v60, %v292_v54  ;;  %v556_v10 = vrot.slane %v399_v62, %v2594_v8  ;;  %v667_v11 = vmul.f32 %v540_v61, %v291_v38  ;;  %v408_v20 = vcombine.high %v1686_v14, %v1686_v14 }
  0xac   : > { %1999 = vmatpush3.bf16.msra.mxu0 %v1998_v52  ;;  %2005 = vmatpush3.bf16.msra.mxu1 %v2004_v57  ;;  %v668_v12 = vmul.f32 %v544_v0, %v291_v38  ;;  %v560_v13 = vrot.slane %v400_v2, %v2594_v8  ;;  %v432_v22 = vcombine.high %v1687_v17, %v1687_v17 }
  0xad   : > { %2006 = vmatprep.subr.bf16.mxu0 %v2324_v1  ;;  %2012 = vmatprep.subr.bf16.mxu1 %v2324_v1  ;;  %v2013_v15 = vpack.c.bf16 %v670_v9, %v669_v63  ;;  %v671_v16 = vmul.f32 %v556_v10, %v292_v54  ;;  %v415_v25 = vrot.slane %v1686_v14, %v2591_v7 }
  0xae   : > { %v672_v18 = vmul.f32 %v560_v13, %v292_v54  ;;  %v2010_v21 = vpack.c.bf16 %v668_v12, %v667_v11  ;;  %v422_v26 = vrot.slane %v408_v20, %v2591_v7  ;;  %v439_v27 = vrot.slane %v1687_v17, %v2591_v7  ;;  %v296_v13 = vld [vmem:[%s2601_s8 + $0x38] sm:$0xff] }
  0xaf   : > { %1819 = vmatmul.mubr.msk.f32.vlgmr.msra.gmra.mrb[0].mxu0 %vm694_vm1, %v2632_v3  ;;  %1842 = vmatmul.mubr.msk.f32.vlgmr.msra.gmra.mrb[0].mxu1 %vm694_vm1, %v2632_v3  ;;  %v446_v28 = vrot.slane %v432_v22, %v2591_v7  ;;  %v564_v30 = vrot.slane %v415_v25, %v2594_v8  ;;  %v423_v35 = vcombine.high %v415_v25, %v415_v25 }
  0xb0   : > { %2008 = vmatpush3.bf16.msra.mxu0 %v2007_v6  ;;  %2014 = vmatpush3.bf16.msra.mxu1 %v2013_v15  ;;  %v2016_v23 = vpack.c.bf16 %v672_v18, %v671_v16  ;;  %v568_v31 = vrot.slane %v422_v26, %v2594_v8  ;;  %v580_v33 = vrot.slane %v439_v27, %v2594_v8 }
  0xb1   : > { %1821 = vmatprep.mubr.msk.f32.mxu0 %vm2326_vm0, %v2327_v5  ;;  %1844 = vmatprep.mubr.msk.f32.mxu1 %vm2326_vm0, %v2327_v5  ;;  %v584_v34 = vrot.slane %v446_v28, %v2594_v8  ;;  %v424_v36 = vcombine.high %v422_v26, %v422_v26  ;;  %v447_v38 = vcombine.high %v439_v27, %v439_v27 }
  0xb2   : > { %2009 = vmatprep.subr.bf16.mxu0 %v2324_v1  ;;  %2015 = vmatprep.subr.bf16.mxu1 %v2324_v1  ;;  %v448_v39 = vcombine.high %v446_v28, %v446_v28  ;;  %v673_v41 = vmul.f32 %v564_v30, %v293_v32  ;;  %v674_v42 = vmul.f32 %v568_v31, %v293_v32 }
  0xb3   : > { %1822 = vmatmul.mubr.msk.f32.gmra.mrb[2].mxu0 %vm694_vm1, %v2644_v19  ;;  %1845 = vmatmul.mubr.msk.f32.gmra.mrb[2].mxu1 %vm694_vm1, %v2644_v19  ;;  %v677_v43 = vmul.f32 %v580_v33, %v294_v37  ;;  %v678_v44 = vmul.f32 %v584_v34, %v294_v37  ;;  %v572_v45 = vrot.slane %v423_v35, %v2594_v8 }
  0xb4   : > { %1824 = vmatprep.mubr.msk.f32.mxu0 %vm2326_vm0, %v2327_v5  ;;  %1847 = vmatprep.mubr.msk.f32.mxu1 %vm2326_vm0, %v2327_v5  ;;  %v576_v46 = vrot.slane %v424_v36, %v2594_v8  ;;  %v588_v47 = vrot.slane %v447_v38, %v2594_v8  ;;  %v592_v48 = vrot.slane %v448_v39, %v2594_v8 }
  0xb5   : > { %2011 = vmatpush3.bf16.msra.mxu0 %v2010_v21  ;;  %2017 = vmatpush3.bf16.msra.mxu1 %v2016_v23  ;;  %v2019_v49 = vpack.c.bf16 %v674_v42, %v673_v41  ;;  %v2025_v50 = vpack.c.bf16 %v678_v44, %v677_v43  ;;  %v675_v51 = vmul.f32 %v572_v45, %v293_v32  ;;  %v1493_v44 = vsub.s32 3, %v2583_v4 }
  0xb6   : > { %2018 = vmatprep.subr.bf16.mxu0 %v2324_v1  ;;  %2024 = vmatprep.subr.bf16.mxu1 %v2324_v1  ;;  %v676_v52 = vmul.f32 %v576_v46, %v293_v32  ;;  %v679_v54 = vmul.f32 %v588_v47, %v294_v37  ;;  %v680_v55 = vmul.f32 %v592_v48, %v294_v37  ;;  %v1473_v37 = vsub.s32 2, %v2583_v4 }
  0xb7   : > { %1825 = vmatmul.mubr.msk.f32.gmra.mrb[4].mxu0 %vm694_vm1, %v2658_v24  ;;  %1848 = vmatmul.mubr.msk.f32.gmra.mrb[4].mxu1 %vm694_vm1, %v2658_v24  ;;  %v456_v57 = vcombine.high %v1688_v53, %v1688_v53  ;;  %v480_v59 = vcombine.high %v1689_v56, %v1689_v56  ;;  %v463_v61 = vrot.slane %v1688_v53, %v2591_v7 }
  0xb8   : > { %1827 = vmatprep.mubr.msk.f32.mxu0 %vm2326_vm0, %v2327_v5  ;;  %1850 = vmatprep.mubr.msk.f32.mxu1 %vm2326_vm0, %v2327_v5  ;;  %v2022_v58 = vpack.c.bf16 %v676_v52, %v675_v51  ;;  %v2028_v60 = vpack.c.bf16 %v680_v55, %v679_v54  ;;  %v487_v63 = vrot.slane %v1689_v56, %v2591_v7  ;;  %v1513_v54 = vsub.s32 4, %v2583_v4 }
  0xb9   : > { %v470_v62 = vrot.slane %v456_v57, %v2591_v7  ;;  %v494_v0 = vrot.slane %v480_v59, %v2591_v7  ;;  %v596_v2 = vrot.slane %v463_v61, %v2594_v8  ;;  %v295_v7 = vld [vmem:[%s2601_s8 + $0x30] sm:$0xff]  ;;  %v471_v11 = vcombine.high %v463_v61, %v463_v61 }
  0xba   : > { %v612_v9 = vrot.slane %v487_v63, %v2594_v8  ;;  %v495_v14 = vcombine.high %v487_v63, %v487_v63 }
  0xbb   : > { %1828 = vmatmul.mubr.msk.f32.gmra.mrb[6].mxu0 %vm694_vm1, %v2674_v29  ;;  %1851 = vmatmul.mubr.msk.f32.gmra.mrb[6].mxu1 %vm694_vm1, %v2674_v29  ;;  %v600_v6 = vrot.slane %v470_v62, %v2594_v8  ;;  %v616_v10 = vrot.slane %v494_v0, %v2594_v8  ;;  %v472_v12 = vcombine.high %v470_v62, %v470_v62 }
  0xbc   : > { %1830 = vmatprep.mubr.msk.f32.mxu0 %vm2326_vm0, %v2327_v5  ;;  %1853 = vmatprep.mubr.msk.f32.mxu1 %vm2326_vm0, %v2327_v5  ;;  %v496_v15 = vcombine.high %v494_v0, %v494_v0  ;;  %v681_v16 = vmul.f32 %v596_v2, %v295_v7  ;;  %v685_v18 = vmul.f32 %v612_v9, %v296_v13 }
  0xbd   : > { %v682_v17 = vmul.f32 %v600_v6, %v295_v7  ;;  %v686_v20 = vmul.f32 %v616_v10, %v296_v13  ;;  %v604_v21 = vrot.slane %v471_v11, %v2594_v8  ;;  %v608_v22 = vrot.slane %v472_v12, %v2594_v8 }
  0xbe   : > { %v620_v23 = vrot.slane %v495_v14, %v2594_v8  ;;  %v624_v25 = vrot.slane %v496_v15, %v2594_v8 }
  0xbf   : > { %1831 = vmatmul.mubr.msk.f32.gmra.mrb[8].mxu0 %vm694_vm1, %v2690_v40  ;;  %1854 = vmatmul.mubr.msk.f32.gmra.mrb[8].mxu1 %vm694_vm1, %v2690_v40  ;;  %v2031_v26 = vpack.c.bf16 %v682_v17, %v681_v16  ;;  %v2037_v27 = vpack.c.bf16 %v686_v20, %v685_v18  ;;  %v683_v28 = vmul.f32 %v604_v21, %v295_v7 }
  0xc0   : > { %1864 = vmatprep.mubr.msk.f32.mxu0 %vm2326_vm0, %v2327_v5  ;;  %1887 = vmatprep.mubr.msk.f32.mxu1 %vm2326_vm0, %v2327_v5  ;;  %v684_v30 = vmul.f32 %v608_v22, %v295_v7  ;;  %v687_v31 = vmul.f32 %v620_v23, %v296_v13  ;;  %v688_v32 = vmul.f32 %v624_v25, %v296_v13 }
  0xc2   : > { %v2034_v33 = vpack.c.bf16 %v684_v30, %v683_v28  ;;  %v2040_v34 = vpack.c.bf16 %v688_v32, %v687_v31 }
  0xc3   : > { %1865 = vmatmul.mubr.msk.f32.vlgmr.msra.gmra.mrb[10].mxu0 %vm694_vm1, %v2632_v3  ;;  %1888 = vmatmul.mubr.msk.f32.vlgmr.msra.gmra.mrb[10].mxu1 %vm694_vm1, %v2632_v3 }
  0xc4   : > { %2020 = vmatpush3.bf16.msra.mxu0 %v2019_v49  ;;  %2026 = vmatpush3.bf16.msra.mxu1 %v2025_v50 }
  0xc5   : > { %1867 = vmatprep.mubr.msk.f32.mxu0 %vm2326_vm0, %v2327_v5  ;;  %1890 = vmatprep.mubr.msk.f32.mxu1 %vm2326_vm0, %v2327_v5 }
  0xc6   : > { %2021 = vmatprep.subr.bf16.mxu0 %v2324_v1  ;;  %2027 = vmatprep.subr.bf16.mxu1 %v2324_v1 }
  0xc7   : > { %1868 = vmatmul.mubr.msk.f32.gmra.mrb[12].mxu0 %vm694_vm1, %v2644_v19  ;;  %1891 = vmatmul.mubr.msk.f32.gmra.mrb[12].mxu1 %vm694_vm1, %v2644_v19 }
  0xc8   : > { %1870 = vmatprep.mubr.msk.f32.mxu0 %vm2326_vm0, %v2327_v5  ;;  %1893 = vmatprep.mubr.msk.f32.mxu1 %vm2326_vm0, %v2327_v5 }
  0xc9   : > { %2023 = vmatpush3.bf16.msra.mxu0 %v2022_v58  ;;  %2029 = vmatpush3.bf16.msra.mxu1 %v2028_v60 }
  0xca   : > { %2030 = vmatprep.subr.bf16.mxu0 %v2324_v1  ;;  %2036 = vmatprep.subr.bf16.mxu1 %v2324_v1 }
  0xcb   : > { %1871 = vmatmul.mubr.msk.f32.gmra.mrb[14].mxu0 %vm694_vm1, %v2658_v24  ;;  %1894 = vmatmul.mubr.msk.f32.gmra.mrb[14].mxu1 %vm694_vm1, %v2658_v24 }
  0xcc   : > { %1873 = vmatprep.mubr.msk.f32.mxu0 %vm2326_vm0, %v2327_v5  ;;  %1896 = vmatprep.mubr.msk.f32.mxu1 %vm2326_vm0, %v2327_v5 }
  0xcf   : > { %1874 = vmatmul.mubr.msk.f32.gmra.mrb[16].mxu0 %vm694_vm1, %v2674_v29  ;;  %1897 = vmatmul.mubr.msk.f32.gmra.mrb[16].mxu1 %vm694_vm1, %v2674_v29 }
  0xd0   : > { %1876 = vmatprep.mubr.msk.f32.mxu0 %vm2326_vm0, %v2327_v5  ;;  %1899 = vmatprep.mubr.msk.f32.mxu1 %vm2326_vm0, %v2327_v5 }
  0xd3   : > { %1877 = vmatmul.mubr.msk.f32.gmra.mrb[18].mxu0 %vm694_vm1, %v2690_v40  ;;  %1900 = vmatmul.mubr.msk.f32.gmra.mrb[18].mxu1 %vm694_vm1, %v2690_v40 }
  0xd4   : > { %1910 = vmatprep.mubr.msk.f32.mxu0 %vm2326_vm0, %v2327_v5  ;;  %1933 = vmatprep.mubr.msk.f32.mxu1 %vm2326_vm0, %v2327_v5 }
  0xd7   : > { %1911 = vmatmul.mubr.msk.f32.vlgmr.msra.gmra.mrb[20].mxu0 %vm694_vm1, %v2632_v3  ;;  %1934 = vmatmul.mubr.msk.f32.vlgmr.msra.gmra.mrb[20].mxu1 %vm694_vm1, %v2632_v3 }
  0xd8   : > { %2032 = vmatpush3.bf16.msra.mxu0 %v2031_v26  ;;  %2038 = vmatpush3.bf16.msra.mxu1 %v2037_v27 }
  0xd9   : > { %1913 = vmatprep.mubr.msk.f32.mxu0 %vm2326_vm0, %v2327_v5  ;;  %1936 = vmatprep.mubr.msk.f32.mxu1 %vm2326_vm0, %v2327_v5 }
  0xda   : > { %2033 = vmatprep.subr.bf16.mxu0 %v2324_v1  ;;  %2039 = vmatprep.subr.bf16.mxu1 %v2324_v1  ;;  %v1453_v1 = vsub.s32 1, %v2583_v4 }
  0xdb   : > { %1914 = vmatmul.mubr.msk.f32.gmra.mrb[22].mxu0 %vm694_vm1, %v2644_v19  ;;  %1937 = vmatmul.mubr.msk.f32.gmra.mrb[22].mxu1 %vm694_vm1, %v2644_v19 }
  0xdc   : > { %1916 = vmatprep.mubr.msk.f32.mxu0 %vm2326_vm0, %v2327_v5  ;;  %1939 = vmatprep.mubr.msk.f32.mxu1 %vm2326_vm0, %v2327_v5 }
  0xdd   : > { %2035 = vmatpush3.bf16.msra.mxu0 %v2034_v33  ;;  %2041 = vmatpush3.bf16.msra.mxu1 %v2040_v34 }
  0xdf   : > { %1917 = vmatmul.mubr.msk.f32.gmra.mrb[24].mxu0 %vm694_vm1, %v2658_v24  ;;  %1940 = vmatmul.mubr.msk.f32.gmra.mrb[24].mxu1 %vm694_vm1, %v2658_v24 }
  0xe0   : > { %1919 = vmatprep.mubr.msk.f32.mxu0 %vm2326_vm0, %v2327_v5  ;;  %1942 = vmatprep.mubr.msk.f32.mxu1 %vm2326_vm0, %v2327_v5 }
  0xe3   : > { %1920 = vmatmul.mubr.msk.f32.gmra.mrb[26].mxu0 %vm694_vm1, %v2674_v29  ;;  %1943 = vmatmul.mubr.msk.f32.gmra.mrb[26].mxu1 %vm694_vm1, %v2674_v29 }
  0xe4   : > { %1922 = vmatprep.mubr.msk.f32.mxu0 %vm2326_vm0, %v2327_v5  ;;  %1945 = vmatprep.mubr.msk.f32.mxu1 %vm2326_vm0, %v2327_v5 }
  0xe7   : > { %1923 = vmatmul.mubr.msk.f32.gmra.mrb[28].mxu0 %vm694_vm1, %v2690_v40  ;;  %1946 = vmatmul.mubr.msk.f32.gmra.mrb[28].mxu1 %vm694_vm1, %v2690_v40 }
  0xe8   : > { %1956 = vmatprep.mubr.msk.f32.mxu0 %vm2326_vm0, %v2327_v5  ;;  %1979 = vmatprep.mubr.msk.f32.mxu1 %vm2326_vm0, %v2327_v5 }
  0xeb   : > { %1957 = vmatmul.mubr.msk.f32.vlgmr.msra.gmra.mrb[30].mxu0 %vm694_vm1, %v2632_v3  ;;  %1980 = vmatmul.mubr.msk.f32.vlgmr.msra.gmra.mrb[30].mxu1 %vm694_vm1, %v2632_v3  ;;  %v1430_v3 = vld [vmem:[#allocation5] sm:$0x1f] }
  0xec   : > { %1959 = vmatprep.mubr.msk.f32.mxu0 %vm2326_vm0, %v2327_v5  ;;  %1982 = vmatprep.mubr.msk.f32.mxu1 %vm2326_vm0, %v2327_v5  ;;  %v2848_v36 = vrot.slane %v1430_v3, %v1453_v1  ;;  %v2853_v43 = vrot.slane %v1430_v3, %v1473_v37  ;;  %v2859_v53 = vrot.slane %v1430_v3, %v1493_v44 }
  0xed   : > { %v2864_v63 = vrot.slane %v1430_v3, %v1513_v54 }
  0xef   : > { %1960 = vmatmul.mubr.msk.f32.gmra.mrb[32].mxu0 %vm694_vm1, %v2644_v19  ;;  %1983 = vmatmul.mubr.msk.f32.gmra.mrb[32].mxu1 %vm694_vm1, %v2644_v19 }
  0xf0   : > { %1962 = vmatprep.mubr.msk.f32.mxu0 %vm2326_vm0, %v2327_v5  ;;  %1985 = vmatprep.mubr.msk.f32.mxu1 %vm2326_vm0, %v2327_v5 }
  0xf3   : > { %1963 = vmatmul.mubr.msk.f32.gmra.mrb[34].mxu0 %vm694_vm1, %v2658_v24  ;;  %1986 = vmatmul.mubr.msk.f32.gmra.mrb[34].mxu1 %vm694_vm1, %v2658_v24  ;;  %v2846_v24 = vrot.slane %v1430_v3, %v2594_v8 }
  0xf4   : > { %1965 = vmatprep.mubr.msk.f32.mxu0 %vm2326_vm0, %v2327_v5  ;;  %1988 = vmatprep.mubr.msk.f32.mxu1 %vm2326_vm0, %v2327_v5 }
  0xf7   : > { %1966 = vmatmul.mubr.msk.f32.gmra.mrb[36].mxu0 %vm694_vm1, %v2674_v29  ;;  %1989 = vmatmul.mubr.msk.f32.gmra.mrb[36].mxu1 %vm694_vm1, %v2674_v29 }
  0xf8   : > { %1968 = vmatprep.mubr.msk.f32.mxu0 %vm2326_vm0, %v2327_v5  ;;  %1991 = vmatprep.mubr.msk.f32.mxu1 %vm2326_vm0, %v2327_v5 }
  0xfb   : > { %1969 = vmatmul.mubr.msk.f32.gmra.mrb[38].mxu0 %vm694_vm1, %v2690_v40  ;;  %1992 = vmatmul.mubr.msk.f32.gmra.mrb[38].mxu1 %vm694_vm1, %v2690_v40 }
 0x182   : > { %v776_v19 = vpop.f32.mrb[0].mxu0  ;;  %v866_v29 = vpop.f32.mrb[0].mxu1 }
 0x183   : > { %v1820_v35 = vpop.f32.mrb[1].mxu0  ;;  %v1843_v5 = vpop.f32.mrb[1].mxu1  ;;  %v1435_v39 = vmul.f32 %v2846_v24, %v776_v19  ;;  %v1436_v8 = vmul.f32 %v2846_v24, %v866_v29 }
 0x186   : > { %v781_v38 = vpop.f32.mrb[2].mxu0  ;;  %v871_v40 = vpop.f32.mrb[2].mxu1 }
 0x187   : > { %v1455_v41 = vmul.f32 %v2848_v36, %v781_v38  ;;  %v1823_v42 = vpop.f32.mrb[3].mxu0  ;;  %v1456_v45 = vmul.f32 %v2848_v36, %v871_v40  ;;  %v1846_v46 = vpop.f32.mrb[3].mxu1 }
 0x189   : > { %v1463_v47 = vadd.f32 %v1455_v41, %v1435_v39  ;;  %v1464_v48 = vadd.f32 %v1456_v45, %v1436_v8 }
 0x18a   : > { %v786_v49 = vpop.f32.mrb[4].mxu0  ;;  %v876_v51 = vpop.f32.mrb[4].mxu1 }
 0x18b   : > { %v1475_v50 = vmul.f32 %v2853_v43, %v786_v49  ;;  %v1826_v52 = vpop.f32.mrb[5].mxu0  ;;  %v1476_v55 = vmul.f32 %v2853_v43, %v876_v51  ;;  %v1849_v56 = vpop.f32.mrb[5].mxu1 }
 0x18d   : > { %v1483_v57 = vadd.f32 %v1475_v50, %v1463_v47  ;;  %v1484_v58 = vadd.f32 %v1476_v55, %v1464_v48 }
 0x18e   : > { %v791_v59 = vpop.f32.mrb[6].mxu0  ;;  %v881_v61 = vpop.f32.mrb[6].mxu1 }
 0x18f   : > { %v1495_v60 = vmul.f32 %v2859_v53, %v791_v59  ;;  %v1829_v62 = vpop.f32.mrb[7].mxu0  ;;  %v1496_v0 = vmul.f32 %v2859_v53, %v881_v61  ;;  %v1852_v2 = vpop.f32.mrb[7].mxu1 }
 0x191   : > { %v1503_v6 = vadd.f32 %v1495_v60, %v1483_v57  ;;  %v1504_v7 = vadd.f32 %v1496_v0, %v1484_v58 }
 0x192   : > { %v796_v9 = vpop.f32.mrb[8].mxu0  ;;  %v886_v10 = vpop.f32.mrb[8].mxu1 }
 0x193   : > { %v1515_v4 = vmul.f32 %v2864_v63, %v796_v9  ;;  %v1832_v11 = vpop.f32.mrb[9].mxu0  ;;  %v1516_v12 = vmul.f32 %v2864_v63, %v886_v10  ;;  %v1855_v13 = vpop.f32.mrb[9].mxu1 }
 0x195   : > { %v1523_v14 = vadd.f32 %v1515_v4, %v1503_v6  ;;  %v1524_v15 = vadd.f32 %v1516_v12, %v1504_v7 }
 0x196   : > { %v956_v16 = vpop.f32.mrb[10].mxu0  ;;  %v1046_v17 = vpop.f32.mrb[10].mxu1 }
 0x197   : > { %1531 = vst [vmem:[%s2871_s12] sm:$0xff] %v1523_v14  ;;  %v1866_v18 = vpop.f32.mrb[11].mxu0  ;;  %1532 = vst [vmem:[%s2871_s12 + $0x8] sm:$0xff] %v1524_v15  ;;  %v1889_v20 = vpop.f32.mrb[11].mxu1  ;;  %v1437_v22 = vmul.f32 %v2846_v24, %v956_v16  ;;  %v1438_v27 = vmul.f32 %v2846_v24, %v1046_v17 }
 0x19a   : > { %v961_v21 = vpop.f32.mrb[12].mxu0  ;;  %v1051_v25 = vpop.f32.mrb[12].mxu1 }
 0x19b   : > { %v1457_v23 = vmul.f32 %v2848_v36, %v961_v21  ;;  %v1869_v26 = vpop.f32.mrb[13].mxu0  ;;  %v1458_v28 = vmul.f32 %v2848_v36, %v1051_v25  ;;  %v1892_v30 = vpop.f32.mrb[13].mxu1 }
 0x19d   : > { %v1465_v31 = vadd.f32 %v1457_v23, %v1437_v22  ;;  %v1466_v32 = vadd.f32 %v1458_v28, %v1438_v27 }
 0x19e   : > { %v966_v33 = vpop.f32.mrb[14].mxu0  ;;  %v1056_v1 = vpop.f32.mrb[14].mxu1 }
 0x19f   : > { %v1477_v34 = vmul.f32 %v2853_v43, %v966_v33  ;;  %v1872_v3 = vpop.f32.mrb[15].mxu0  ;;  %v1478_v19 = vmul.f32 %v2853_v43, %v1056_v1  ;;  %v1895_v29 = vpop.f32.mrb[15].mxu1 }
 0x1a1   : > { %v1485_v35 = vadd.f32 %v1477_v34, %v1465_v31  ;;  %v1486_v37 = vadd.f32 %v1478_v19, %v1466_v32 }
 0x1a2   : > { %v971_v5 = vpop.f32.mrb[16].mxu0  ;;  %v1061_v39 = vpop.f32.mrb[16].mxu1 }
 0x1a3   : > { %v1497_v38 = vmul.f32 %v2859_v53, %v971_v5  ;;  %v1875_v41 = vpop.f32.mrb[17].mxu0  ;;  %v1498_v40 = vmul.f32 %v2859_v53, %v1061_v39  ;;  %v1898_v42 = vpop.f32.mrb[17].mxu1 }
 0x1a5   : > { %v1505_v44 = vadd.f32 %v1497_v38, %v1485_v35  ;;  %v1506_v8 = vadd.f32 %v1498_v40, %v1486_v37 }
 0x1a6   : > { %v976_v45 = vpop.f32.mrb[18].mxu0  ;;  %v1066_v47 = vpop.f32.mrb[18].mxu1 }
 0x1a7   : > { %v1517_v46 = vmul.f32 %v2864_v63, %v976_v45  ;;  %v1878_v48 = vpop.f32.mrb[19].mxu0  ;;  %v1518_v49 = vmul.f32 %v2864_v63, %v1066_v47  ;;  %v1901_v50 = vpop.f32.mrb[19].mxu1 }
 0x1a9   : > { %v1525_v51 = vadd.f32 %v1517_v46, %v1505_v44  ;;  %v1526_v52 = vadd.f32 %v1518_v49, %v1506_v8 }
 0x1aa   : > { %v1136_v54 = vpop.f32.mrb[20].mxu0  ;;  %v1226_v55 = vpop.f32.mrb[20].mxu1 }
 0x1ab   : > { %1533 = vst [vmem:[%s2871_s12 + $0x10] sm:$0xff] %v1525_v51  ;;  %v1912_v56 = vpop.f32.mrb[21].mxu0  ;;  %1534 = vst [vmem:[%s2871_s12 + $0x18] sm:$0xff] %v1526_v52  ;;  %v1935_v57 = vpop.f32.mrb[21].mxu1  ;;  %v1439_v59 = vmul.f32 %v2846_v24, %v1136_v54  ;;  %v1440_v0 = vmul.f32 %v2846_v24, %v1226_v55 }
 0x1ae   : > { %v1141_v58 = vpop.f32.mrb[22].mxu0  ;;  %v1231_v61 = vpop.f32.mrb[22].mxu1 }
 0x1af   : > { %v1459_v60 = vmul.f32 %v2848_v36, %v1141_v58  ;;  %v1915_v62 = vpop.f32.mrb[23].mxu0  ;;  %v1460_v2 = vmul.f32 %v2848_v36, %v1231_v61  ;;  %v1938_v6 = vpop.f32.mrb[23].mxu1 }
 0x1b1   : > { %v1467_v7 = vadd.f32 %v1459_v60, %v1439_v59  ;;  %v1468_v9 = vadd.f32 %v1460_v2, %v1440_v0 }
 0x1b2   : > { %v1146_v4 = vpop.f32.mrb[24].mxu0  ;;  %v1236_v11 = vpop.f32.mrb[24].mxu1 }
 0x1b3   : > { %v1479_v10 = vmul.f32 %v2853_v43, %v1146_v4  ;;  %v1918_v12 = vpop.f32.mrb[25].mxu0  ;;  %v1480_v13 = vmul.f32 %v2853_v43, %v1236_v11  ;;  %v1941_v14 = vpop.f32.mrb[25].mxu1 }
 0x1b5   : > { %v1487_v15 = vadd.f32 %v1479_v10, %v1467_v7  ;;  %v1488_v16 = vadd.f32 %v1480_v13, %v1468_v9 }
 0x1b6   : > { %v1151_v17 = vpop.f32.mrb[26].mxu0  ;;  %v1241_v20 = vpop.f32.mrb[26].mxu1 }
 0x1b7   : > { %v1499_v18 = vmul.f32 %v2859_v53, %v1151_v17  ;;  %v1921_v21 = vpop.f32.mrb[27].mxu0  ;;  %v1500_v22 = vmul.f32 %v2859_v53, %v1241_v20  ;;  %v1944_v23 = vpop.f32.mrb[27].mxu1 }
 0x1b9   : > { %v1507_v25 = vadd.f32 %v1499_v18, %v1487_v15  ;;  %v1508_v26 = vadd.f32 %v1500_v22, %v1488_v16 }
 0x1ba   : > { %v1156_v27 = vpop.f32.mrb[28].mxu0  ;;  %v1246_v30 = vpop.f32.mrb[28].mxu1 }
 0x1bb   : > { %v1519_v28 = vmul.f32 %v2864_v63, %v1156_v27  ;;  %v1924_v31 = vpop.f32.mrb[29].mxu0  ;;  %v1520_v32 = vmul.f32 %v2864_v63, %v1246_v30  ;;  %v1947_v33 = vpop.f32.mrb[29].mxu1 }
 0x1bd   : > { %v1527_v34 = vadd.f32 %v1519_v28, %v1507_v25  ;;  %v1528_v1 = vadd.f32 %v1520_v32, %v1508_v26 }
 0x1be   : > { %v1316_v3 = vpop.f32.mrb[30].mxu0  ;;  %v1406_v19 = vpop.f32.mrb[30].mxu1 }
 0x1bf   : > { %1535 = vst [vmem:[%s2871_s12 + $0x20] sm:$0xff] %v1527_v34  ;;  %v1958_v29 = vpop.f32.mrb[31].mxu0  ;;  %1536 = vst [vmem:[%s2871_s12 + $0x28] sm:$0xff] %v1528_v1  ;;  %v1981_v35 = vpop.f32.mrb[31].mxu1  ;;  %v1441_v5 = vmul.f32 %v2846_v24, %v1316_v3  ;;  %v1442_v40 = vmul.f32 %v2846_v24, %v1406_v19 }
 0x1c2   : > { %v1321_v37 = vpop.f32.mrb[32].mxu0  ;;  %v1411_v39 = vpop.f32.mrb[32].mxu1 }
 0x1c3   : > { %v1461_v38 = vmul.f32 %v2848_v36, %v1321_v37  ;;  %v1961_v41 = vpop.f32.mrb[33].mxu0  ;;  %v1462_v42 = vmul.f32 %v2848_v36, %v1411_v39  ;;  %v1984_v44 = vpop.f32.mrb[33].mxu1 }
 0x1c5   : > { %v1469_v8 = vadd.f32 %v1461_v38, %v1441_v5  ;;  %v1470_v45 = vadd.f32 %v1462_v42, %v1442_v40 }
 0x1c6   : > { %v1326_v46 = vpop.f32.mrb[34].mxu0  ;;  %v1416_v48 = vpop.f32.mrb[34].mxu1 }
 0x1c7   : > { %v1481_v47 = vmul.f32 %v2853_v43, %v1326_v46  ;;  %v1964_v49 = vpop.f32.mrb[35].mxu0  ;;  %v1482_v50 = vmul.f32 %v2853_v43, %v1416_v48  ;;  %v1987_v51 = vpop.f32.mrb[35].mxu1 }
 0x1c9   : > { %v1489_v52 = vadd.f32 %v1481_v47, %v1469_v8  ;;  %v1490_v54 = vadd.f32 %v1482_v50, %v1470_v45 }
 0x1ca   : > { %v1331_v55 = vpop.f32.mrb[36].mxu0  ;;  %v1421_v56 = vpop.f32.mrb[36].mxu1 }
 0x1cb   : > { %v1501_v24 = vmul.f32 %v2859_v53, %v1331_v55  ;;  %v1967_v36 = vpop.f32.mrb[37].mxu0  ;;  %v1502_v57 = vmul.f32 %v2859_v53, %v1421_v56  ;;  %v1990_v58 = vpop.f32.mrb[37].mxu1 }
 0x1cd   : > { %v1509_v59 = vadd.f32 %v1501_v24, %v1489_v52  ;;  %v1510_v60 = vadd.f32 %v1502_v57, %v1490_v54 }
 0x1ce   : > { %v1336_v61 = vpop.f32.mrb[38].mxu0  ;;  %v1426_v62 = vpop.f32.mrb[38].mxu1 }
 0x1cf   : > { %v1521_v43 = vmul.f32 %v2864_v63, %v1336_v61  ;;  %v1970_v0 = vpop.f32.mrb[39].mxu0  ;;  %v1522_v53 = vmul.f32 %v2864_v63, %v1426_v62  ;;  %v1993_v2 = vpop.f32.mrb[39].mxu1 }
 0x1d1   : > { %v1529_v6 = vadd.f32 %v1521_v43, %v1509_v59  ;;  %v1530_v7 = vadd.f32 %v1522_v53, %v1510_v60 }
 0x1d3   : > { %1537 = vst [vmem:[%s2871_s12 + $0x30] sm:$0xff] %v1529_v6  ;;  %1538 = vst [vmem:[%s2871_s12 + $0x38] sm:$0xff] %v1530_v7 }
 0x1d4   : > { %2253 = shalt.err (!%p2250_p4)
}
 0x1d5   : > { %s2254_s20 = scalar_lea.hbm %s2916_s7, 1024  ;;  %s2258_s9 = scalar_lea.hbm %s2966_s4, 2048 }
 0x1d6   : > { %p2255_p2 = scmp.ne.s32.totalorder %s2916_s7, %s2254_s20  ;;  %p2259_p13 = scmp.lt.u32.totalorder %s2916_s7, %s2966_s4 }
 0x1d7   : > { %p2260_p3 = scmp.lt.u32.totalorder %s2258_s9, %s2254_s20  ;;  %p2262_p7 = scmp.lt.u32.totalorder %s2254_s20, %s2916_s7 }
 0x1d8   : > { %p2256_p6 = pnand %p2255_p2, %p3004_p9 }
 0x1d9   : > { %p2261_p12 = por %p2260_p3, %p2259_p13 }
 0x1da   : > { %p2257_p5 = pneg %p2256_p6 }
 0x1db   : > { %p2263_p0 = por %p2262_p7, %p2261_p12 }
 0x1dd   : > { %p2264_p11 = pnand %p2263_p0, %p2257_p5 }
 0x1df   : > { %2267 = shalt.err (!%p2264_p11)
}
 0x1e0   : > { %s2329_s23 = smov 128   ;;  %s2330_s26 = smov 8  }
 0x1e1   : > { %2054 = dma.vmem_to_hbm [thread:$0]  (%p3004_p9), %s2910_s6, 1024, %s2916_s7, %s1540_s19, %s2329_s23, %s2329_s23, %s2330_s26  }
 0x1e2 PF: > { %s1568_s8 = sand.u32 1, %s2302_s15   ;;  %p3005_p8 = scmp.ne.s32.totalorder %s2983_s28, 0 }
 0x1e3   : > { %p3006_p10 = scmp.ge.s32.totalorder %s2314_s18, 2  ;;  %s1569_s12 = scalar_lea.sflag [#allocation4], %s1568_s8 }
 0x1e5   : > { %p2071_p1 = pnand %p3006_p10, %p3005_p8 }
 0x1e7   : > { %2297 = dma.done.wait (!%p2071_p1), %s1569_s12, 1024  }
 0x1e8   : > { %2299 = vsyncadd (!%p2071_p1), %s1569_s12, 4294966272  ;;  %s3007_s13 = sld [smem:[#allocation14_spill]]  ;;  %p16_p4 = scmp.ge.s32.totalorder %s2381_s21, 4  }
 0x1e9   : > { %s3008_s15 = smov %s2306_s16  ;;  %s3009_s16 = smov %s2310_s17 }
 0x1ea   : > { %s3011_s18 = smov %s2381_s21  ;;  %18 = sbr.rel (!%p16_p4) target bundleno = 8 (0x8), region = 99 }
 0x1ee   : > { %s3010_s17 = smov %s3007_s13 }
 0x1f1   :  { %1574 = vsyncpa [#allocation3], 1 }
 0x1f2   :  { %1576 = vsyncpa [#allocation3 + $0x1], 1 }
 0x1f3   :  { %1577 = vsyncpa [#allocation6], 1 }
 0x1f4   :  { %1578 = vsyncpa [#allocation4], 1 }
 0x1f5   :  { %1580 = vsyncpa [#allocation4 + $0x1], 1 }

</bundles_post_ra>
